<compile_context>
chip_gen: v5e
topology: v5e:2x2
jax: 0.10.0
libtpu: 0.0.40
codegen_flags: <defaults>
</compile_context>

<pallas_src>
import jax
import jax.numpy as jnp
from jax.experimental import pallas as pl
from jax.experimental.pallas import tpu as pltpu


def _round_up(x, m):
    return ((x + m - 1) // m) * m


def classifier_kernel(ids_ref, tfc_ref, bfc_ref, wout_ref, bout_ref, out_ref):
    # ids_ref  : (TB, S)   int32 token ids for this batch tile
    # tfc_ref  : (Vp, Hp)  folded table: (emb_table * 1/S) @ w_fc.T, padded
    # bfc_ref  : (1, Hp)   f32 fc bias, zero-padded
    # wout_ref : (Hp, Cp)  w_out.T, zero-padded
    # bout_ref : (1, Cp)   f32 output bias, zero-padded
    # out_ref  : (TB, Cp)  f32 logits (lane-dense; real classes in [:, :C])
    ids = ids_ref[...]                                   # (TB, S) int32
    tb, s = ids.shape
    vp = tfc_ref.shape[0]

    # counts[b, t] = #{j : ids[b, j] == t}, so counts @ table == sum-pool of
    # the embedding rows.  Accumulated one token at a time so the live
    # intermediate stays (TB, Vp) regardless of S (no (TB, S, Vp) one-hot
    # spilling through the store slot).  S is static -> full unroll.
    vocab_iota = jax.lax.broadcasted_iota(jnp.int32, (tb, vp), 1)
    counts = jnp.zeros((tb, vp), jnp.float32)
    for j in range(s):
        counts = counts + (ids[:, j:j + 1] == vocab_iota).astype(jnp.float32)

    # Mean-pool + fc fused into one MXU matmul: (TB, Vp) @ (Vp, Hp).
    h = jnp.dot(counts.astype(tfc_ref.dtype), tfc_ref[...],
                preferred_element_type=jnp.float32)      # (TB, Hp) f32
    h = jnp.maximum(h + bfc_ref[...], 0.0)               # bias + ReLU

    logits = jnp.dot(h.astype(wout_ref.dtype), wout_ref[...],
                     preferred_element_type=jnp.float32)  # (TB, Cp) f32
    out_ref[...] = (logits + bout_ref[...]).astype(out_ref.dtype)


def prepare_kernel_params(params, seq_len, weight_dtype=jnp.float32):
    """One-time prep: fold mean(1/S)+fc into the table, transpose, pad to 128.

    weight_dtype=jnp.bfloat16 is recommended for production sizes (4-8x MXU
    throughput, half the weight bytes); keep f32 when 1e-4 accuracy matters.
    """
    table = params["embedding"].astype(jnp.float32)   # (V, E)
    w_fc = params["w_fc"].astype(jnp.float32)         # (H, E) PyTorch layout
    b_fc = params["b_fc"].astype(jnp.float32)         # (H,)
    w_out = params["w_out"].astype(jnp.float32)       # (C, H)
    b_out = params["b_out"].astype(jnp.float32)       # (C,)

    V, _E = table.shape
    H = w_fc.shape[0]
    C = w_out.shape[0]
    Vp = _round_up(V, 128)
    Hp = _round_up(H, 128)
    Cp = _round_up(C, 128)

    # Fold the 1/S of the mean and the fc layer into the embedding table.
    table_fc = (table * (1.0 / float(seq_len))) @ jnp.transpose(w_fc)  # (V, H)
    tfc = jnp.zeros((Vp, Hp), jnp.float32).at[:V, :H].set(table_fc)
    bfc = jnp.zeros((1, Hp), jnp.float32).at[:, :H].set(b_fc)
    wout = jnp.zeros((Hp, Cp), jnp.float32).at[:H, :C].set(jnp.transpose(w_out))
    bout = jnp.zeros((1, Cp), jnp.float32).at[:, :C].set(b_out)

    return {
        "table_fc": tfc.astype(weight_dtype),
        "b_fc": bfc,                       # biases stay f32 (added post-MXU)
        "w_out": wout.astype(weight_dtype),
        "b_out": bout,
        "vocab_size": V,
        "num_classes": C,
        "seq_len": seq_len,
    }


def scam_sms_classifier_forward(token_ids, kparams):
    """token_ids: (B, S) int ids; kparams: output of prepare_kernel_params.

    Returns (B, num_classes) f32 logits.
    """
    tfc = kparams["table_fc"]
    bfc = kparams["b_fc"]
    wout = kparams["w_out"]
    bout = kparams["b_out"]
    V = kparams["vocab_size"]
    C = kparams["num_classes"]

    B, S = token_ids.shape
    assert S == kparams["seq_len"], "seq length baked into the folded table"
    Vp, Hp = tfc.shape
    Cp = wout.shape[1]

    # Match jnp.take's clipping semantics for out-of-range ids (PyTorch
    # nn.Embedding would raise instead) — cheap and keeps garbage ids from
    # silently vanishing from the mean.
    ids = jnp.clip(token_ids.astype(jnp.int32), 0, V - 1)

    # Batch tiling: >= 2 grid steps once B >= 16 so the "parallel" axis can
    # shard across v7x's two TensorCores; tiles sublane-aligned (mult. of 8),
    # capped at the MXU height.  Tiny B degenerates to grid=(1,).
    if B < 16:
        TB = B
    else:
        TB = min(128, _round_up(pl.cdiv(B, 2), 8))
    grid = (pl.cdiv(B, TB),)
    # NOTE: when B % TB != 0 the last ids tile reads padded rows; the
    # resulting logits land only in output rows sliced away below. Do not
    # start trusting out_padded rows >= B.

    # Explicit VMEM budget: weights (x2 for the non-single-buffered fallback)
    # + double-buffered ids/out tiles + headroom, clamped to v7x's 64 MiB.
    weight_bytes = sum(int(a.size) * a.dtype.itemsize
                       for a in (tfc, bfc, wout, bout))
    io_bytes = 2 * (TB * S * 4 + TB * Cp * 4)
    vmem_limit = int(min(64 << 20,
                         max(16 << 20, 2 * weight_bytes + io_bytes + (2 << 20))))

    def make_call(single_buffer_weights):
        if single_buffer_weights and hasattr(pl, "Buffered"):
            const_kw = dict(pipeline_mode=pl.Buffered(1))
        else:
            const_kw = {}

        def cspec(shape):
            # Constant index_map -> no benefit from double-buffering.
            return pl.BlockSpec(shape, lambda i: (0,) * len(shape), **const_kw)

        return pl.pallas_call(
            classifier_kernel,
            out_shape=jax.ShapeDtypeStruct((B, Cp), jnp.float32),
            grid_spec=pl.GridSpec(
                grid=grid,
                in_specs=[
                    pl.BlockSpec((TB, S), lambda i: (i, 0)),   # token ids
                    cspec((Vp, Hp)),                            # folded table
                    cspec((1, Hp)),                             # fc bias
                    cspec((Hp, Cp)),                            # out weight
                    cspec((1, Cp)),                             # out bias
                ],
                out_specs=pl.BlockSpec((TB, Cp), lambda i: (i, 0)),
            ),
            compiler_params=pltpu.CompilerParams(
                dimension_semantics=("parallel",),
                vmem_limit_bytes=vmem_limit,
            ),
        )(ids, tfc, bfc, wout, bout)

    try:
        out_padded = make_call(single_buffer_weights=True)
    except Exception:
        # Fallback for jax builds whose Mosaic pipeliner rejects Buffered(1).
        out_padded = make_call(single_buffer_weights=False)

    return out_padded[:, :C]


def init_params(key, vocab_size, embed_dim, hidden_dim, num_classes):
    k0, k1, k2, k3, k4 = jax.random.split(key, 5)
    # Roughly PyTorch defaults: N(0,1) embedding, uniform(+-1/sqrt(fan_in)).
    emb = jax.random.normal(k0, (vocab_size, embed_dim), jnp.float32)
    lim_fc = 1.0 / jnp.sqrt(embed_dim)
    w_fc = jax.random.uniform(k1, (hidden_dim, embed_dim), jnp.float32,
                              -lim_fc, lim_fc)
    b_fc = jax.random.uniform(k2, (hidden_dim,), jnp.float32, -lim_fc, lim_fc)
    lim_out = 1.0 / jnp.sqrt(hidden_dim)
    w_out = jax.random.uniform(k3, (num_classes, hidden_dim), jnp.float32,
                               -lim_out, lim_out)
    b_out = jax.random.uniform(k4, (num_classes,), jnp.float32,
                               -lim_out, lim_out)
    return {"embedding": emb, "w_fc": w_fc, "b_fc": b_fc,
            "w_out": w_out, "b_out": b_out}


def reference_forward(token_ids, params):
    emb = jnp.take(params["embedding"], token_ids, axis=0).mean(axis=1)
    h = jnp.maximum(emb @ params["w_fc"].T + params["b_fc"], 0.0)
    return h @ params["w_out"].T + params["b_out"]


if __name__ == "__main__":
    VOCAB, EMBED, HIDDEN, CLASSES = 256, 32, 64, 2
    B, S = 8, 16

    key = jax.random.PRNGKey(0)
    kp, kx = jax.random.split(key)
    params = init_params(kp, VOCAB, EMBED, HIDDEN, CLASSES)
    token_ids = jax.random.randint(kx, (B, S), 0, VOCAB, dtype=jnp.int32)

    kparams = prepare_kernel_params(params, seq_len=S)

    logits = scam_sms_classifier_forward(token_ids, kparams)
    logits = jax.block_until_ready(logits)

    ref = reference_forward(token_ids, params)
    assert logits.shape == (B, CLASSES)
    assert jnp.allclose(logits, ref, atol=1e-4, rtol=1e-4), "mismatch vs reference"

    # TODO(synk): tiktoken encode/decode and the PyTorch training loop have no
    # Pallas equivalent; only the forward pass is implemented.
    print("KERNEL_OK")
</pallas_src>

<mosaic_0001>
module attributes {stable_mosaic.version = 11 : i64} {
  func.func @classifier_kernel(%arg0: i32, %arg1: memref<8x16xi32, #tpu.memory_space<vmem>>, %arg2: memref<256x128xf32, #tpu.memory_space<vmem>>, %arg3: memref<1x128xf32, #tpu.memory_space<vmem>>, %arg4: memref<128x128xf32, #tpu.memory_space<vmem>>, %arg5: memref<1x128xf32, #tpu.memory_space<vmem>>, %arg6: memref<8x128xf32, #tpu.memory_space<vmem>>) attributes {dimension_semantics = [#tpu.dimension_semantics<parallel>], iteration_bounds = array<i64: 1>, scalar_prefetch = 0 : i64, scratch_operands = 0 : i64, tpu.core_type = #tpu.core_type<tc>, window_params = [{transform_indices = @transform_0, window_bounds = array<i64: 8, 16>}, {pipeline_mode = #tpu.pipeline_mode<synchronous>, transform_indices = @transform_1, window_bounds = array<i64: 256, 128>}, {pipeline_mode = #tpu.pipeline_mode<synchronous>, transform_indices = @transform_2, window_bounds = array<i64: 1, 128>}, {pipeline_mode = #tpu.pipeline_mode<synchronous>, transform_indices = @transform_3, window_bounds = array<i64: 128, 128>}, {pipeline_mode = #tpu.pipeline_mode<synchronous>, transform_indices = @transform_4, window_bounds = array<i64: 1, 128>}, {transform_indices = @transform_5, window_bounds = array<i64: 8, 128>}]} {
    %c0 = arith.constant 0 : index
    %c0_0 = arith.constant 0 : index
    %0 = vector.load %arg1[%c0, %c0_0] : memref<8x16xi32, #tpu.memory_space<vmem>>, vector<8x16xi32>
    %1 = tpu.iota {dimensions = array<i32: 1>} : vector<8x256xi32>
    %cst = arith.constant 0.000000e+00 : f32
    %2 = vector.broadcast %cst : f32 to vector<8x256xf32>
    %3 = vector.extract_strided_slice %0 {offsets = [0, 0], sizes = [8, 1], strides = [1, 1]} : vector<8x16xi32> to vector<8x1xi32>
    %4 = vector.broadcast %3 : vector<8x1xi32> to vector<8x256xi32>
    %5 = arith.cmpi eq, %4, %1 : vector<8x256xi32>
    %6 = arith.extui %5 : vector<8x256xi1> to vector<8x256xi32>
    %7 = arith.sitofp %6 : vector<8x256xi32> to vector<8x256xf32>
    %8 = arith.addf %2, %7 : vector<8x256xf32>
    %9 = vector.extract_strided_slice %0 {offsets = [0, 1], sizes = [8, 1], strides = [1, 1]} : vector<8x16xi32> to vector<8x1xi32>
    %10 = vector.broadcast %9 : vector<8x1xi32> to vector<8x256xi32>
    %11 = arith.cmpi eq, %10, %1 : vector<8x256xi32>
    %12 = arith.extui %11 : vector<8x256xi1> to vector<8x256xi32>
    %13 = arith.sitofp %12 : vector<8x256xi32> to vector<8x256xf32>
    %14 = arith.addf %8, %13 : vector<8x256xf32>
    %15 = vector.extract_strided_slice %0 {offsets = [0, 2], sizes = [8, 1], strides = [1, 1]} : vector<8x16xi32> to vector<8x1xi32>
    %16 = vector.broadcast %15 : vector<8x1xi32> to vector<8x256xi32>
    %17 = arith.cmpi eq, %16, %1 : vector<8x256xi32>
    %18 = arith.extui %17 : vector<8x256xi1> to vector<8x256xi32>
    %19 = arith.sitofp %18 : vector<8x256xi32> to vector<8x256xf32>
    %20 = arith.addf %14, %19 : vector<8x256xf32>
    %21 = vector.extract_strided_slice %0 {offsets = [0, 3], sizes = [8, 1], strides = [1, 1]} : vector<8x16xi32> to vector<8x1xi32>
    %22 = vector.broadcast %21 : vector<8x1xi32> to vector<8x256xi32>
    %23 = arith.cmpi eq, %22, %1 : vector<8x256xi32>
    %24 = arith.extui %23 : vector<8x256xi1> to vector<8x256xi32>
    %25 = arith.sitofp %24 : vector<8x256xi32> to vector<8x256xf32>
    %26 = arith.addf %20, %25 : vector<8x256xf32>
    %27 = vector.extract_strided_slice %0 {offsets = [0, 4], sizes = [8, 1], strides = [1, 1]} : vector<8x16xi32> to vector<8x1xi32>
    %28 = vector.broadcast %27 : vector<8x1xi32> to vector<8x256xi32>
    %29 = arith.cmpi eq, %28, %1 : vector<8x256xi32>
    %30 = arith.extui %29 : vector<8x256xi1> to vector<8x256xi32>
    %31 = arith.sitofp %30 : vector<8x256xi32> to vector<8x256xf32>
    %32 = arith.addf %26, %31 : vector<8x256xf32>
    %33 = vector.extract_strided_slice %0 {offsets = [0, 5], sizes = [8, 1], strides = [1, 1]} : vector<8x16xi32> to vector<8x1xi32>
    %34 = vector.broadcast %33 : vector<8x1xi32> to vector<8x256xi32>
    %35 = arith.cmpi eq, %34, %1 : vector<8x256xi32>
    %36 = arith.extui %35 : vector<8x256xi1> to vector<8x256xi32>
    %37 = arith.sitofp %36 : vector<8x256xi32> to vector<8x256xf32>
    %38 = arith.addf %32, %37 : vector<8x256xf32>
    %39 = vector.extract_strided_slice %0 {offsets = [0, 6], sizes = [8, 1], strides = [1, 1]} : vector<8x16xi32> to vector<8x1xi32>
    %40 = vector.broadcast %39 : vector<8x1xi32> to vector<8x256xi32>
    %41 = arith.cmpi eq, %40, %1 : vector<8x256xi32>
    %42 = arith.extui %41 : vector<8x256xi1> to vector<8x256xi32>
    %43 = arith.sitofp %42 : vector<8x256xi32> to vector<8x256xf32>
    %44 = arith.addf %38, %43 : vector<8x256xf32>
    %45 = vector.extract_strided_slice %0 {offsets = [0, 7], sizes = [8, 1], strides = [1, 1]} : vector<8x16xi32> to vector<8x1xi32>
    %46 = vector.broadcast %45 : vector<8x1xi32> to vector<8x256xi32>
    %47 = arith.cmpi eq, %46, %1 : vector<8x256xi32>
    %48 = arith.extui %47 : vector<8x256xi1> to vector<8x256xi32>
    %49 = arith.sitofp %48 : vector<8x256xi32> to vector<8x256xf32>
    %50 = arith.addf %44, %49 : vector<8x256xf32>
    %51 = vector.extract_strided_slice %0 {offsets = [0, 8], sizes = [8, 1], strides = [1, 1]} : vector<8x16xi32> to vector<8x1xi32>
    %52 = vector.broadcast %51 : vector<8x1xi32> to vector<8x256xi32>
    %53 = arith.cmpi eq, %52, %1 : vector<8x256xi32>
    %54 = arith.extui %53 : vector<8x256xi1> to vector<8x256xi32>
    %55 = arith.sitofp %54 : vector<8x256xi32> to vector<8x256xf32>
    %56 = arith.addf %50, %55 : vector<8x256xf32>
    %57 = vector.extract_strided_slice %0 {offsets = [0, 9], sizes = [8, 1], strides = [1, 1]} : vector<8x16xi32> to vector<8x1xi32>
    %58 = vector.broadcast %57 : vector<8x1xi32> to vector<8x256xi32>
    %59 = arith.cmpi eq, %58, %1 : vector<8x256xi32>
    %60 = arith.extui %59 : vector<8x256xi1> to vector<8x256xi32>
    %61 = arith.sitofp %60 : vector<8x256xi32> to vector<8x256xf32>
    %62 = arith.addf %56, %61 : vector<8x256xf32>
    %63 = vector.extract_strided_slice %0 {offsets = [0, 10], sizes = [8, 1], strides = [1, 1]} : vector<8x16xi32> to vector<8x1xi32>
    %64 = vector.broadcast %63 : vector<8x1xi32> to vector<8x256xi32>
    %65 = arith.cmpi eq, %64, %1 : vector<8x256xi32>
    %66 = arith.extui %65 : vector<8x256xi1> to vector<8x256xi32>
    %67 = arith.sitofp %66 : vector<8x256xi32> to vector<8x256xf32>
    %68 = arith.addf %62, %67 : vector<8x256xf32>
    %69 = vector.extract_strided_slice %0 {offsets = [0, 11], sizes = [8, 1], strides = [1, 1]} : vector<8x16xi32> to vector<8x1xi32>
    %70 = vector.broadcast %69 : vector<8x1xi32> to vector<8x256xi32>
    %71 = arith.cmpi eq, %70, %1 : vector<8x256xi32>
    %72 = arith.extui %71 : vector<8x256xi1> to vector<8x256xi32>
    %73 = arith.sitofp %72 : vector<8x256xi32> to vector<8x256xf32>
    %74 = arith.addf %68, %73 : vector<8x256xf32>
    %75 = vector.extract_strided_slice %0 {offsets = [0, 12], sizes = [8, 1], strides = [1, 1]} : vector<8x16xi32> to vector<8x1xi32>
    %76 = vector.broadcast %75 : vector<8x1xi32> to vector<8x256xi32>
    %77 = arith.cmpi eq, %76, %1 : vector<8x256xi32>
    %78 = arith.extui %77 : vector<8x256xi1> to vector<8x256xi32>
    %79 = arith.sitofp %78 : vector<8x256xi32> to vector<8x256xf32>
    %80 = arith.addf %74, %79 : vector<8x256xf32>
    %81 = vector.extract_strided_slice %0 {offsets = [0, 13], sizes = [8, 1], strides = [1, 1]} : vector<8x16xi32> to vector<8x1xi32>
    %82 = vector.broadcast %81 : vector<8x1xi32> to vector<8x256xi32>
    %83 = arith.cmpi eq, %82, %1 : vector<8x256xi32>
    %84 = arith.extui %83 : vector<8x256xi1> to vector<8x256xi32>
    %85 = arith.sitofp %84 : vector<8x256xi32> to vector<8x256xf32>
    %86 = arith.addf %80, %85 : vector<8x256xf32>
    %87 = vector.extract_strided_slice %0 {offsets = [0, 14], sizes = [8, 1], strides = [1, 1]} : vector<8x16xi32> to vector<8x1xi32>
    %88 = vector.broadcast %87 : vector<8x1xi32> to vector<8x256xi32>
    %89 = arith.cmpi eq, %88, %1 : vector<8x256xi32>
    %90 = arith.extui %89 : vector<8x256xi1> to vector<8x256xi32>
    %91 = arith.sitofp %90 : vector<8x256xi32> to vector<8x256xf32>
    %92 = arith.addf %86, %91 : vector<8x256xf32>
    %93 = vector.extract_strided_slice %0 {offsets = [0, 15], sizes = [8, 1], strides = [1, 1]} : vector<8x16xi32> to vector<8x1xi32>
    %94 = vector.broadcast %93 : vector<8x1xi32> to vector<8x256xi32>
    %95 = arith.cmpi eq, %94, %1 : vector<8x256xi32>
    %96 = arith.extui %95 : vector<8x256xi1> to vector<8x256xi32>
    %97 = arith.sitofp %96 : vector<8x256xi32> to vector<8x256xf32>
    %98 = arith.addf %92, %97 : vector<8x256xf32>
    %c0_1 = arith.constant 0 : index
    %c0_2 = arith.constant 0 : index
    %99 = vector.load %arg2[%c0_1, %c0_2] : memref<256x128xf32, #tpu.memory_space<vmem>>, vector<256x128xf32>
    %cst_3 = arith.constant dense<0.000000e+00> : vector<8x128xf32>
    %100 = tpu.matmul %98, %99, %cst_3 {dimension_numbers = #tpu.dot_dimension_numbers<[1], [0], [0], [1], [0, 0, 1, 1], [], []>} : vector<8x256xf32>, vector<256x128xf32>, vector<8x128xf32> -> vector<8x128xf32>
    %c0_4 = arith.constant 0 : index
    %c0_5 = arith.constant 0 : index
    %101 = vector.load %arg3[%c0_4, %c0_5] : memref<1x128xf32, #tpu.memory_space<vmem>>, vector<1x128xf32>
    %102 = vector.broadcast %101 : vector<1x128xf32> to vector<8x128xf32>
    %103 = arith.addf %100, %102 : vector<8x128xf32>
    %cst_6 = arith.constant 0.000000e+00 : f32
    %104 = vector.broadcast %cst_6 : f32 to vector<8x128xf32>
    %105 = arith.maximumf %103, %104 : vector<8x128xf32>
    %c0_7 = arith.constant 0 : index
    %c0_8 = arith.constant 0 : index
    %106 = vector.load %arg4[%c0_7, %c0_8] : memref<128x128xf32, #tpu.memory_space<vmem>>, vector<128x128xf32>
    %cst_9 = arith.constant dense<0.000000e+00> : vector<8x128xf32>
    %107 = tpu.matmul %105, %106, %cst_9 {dimension_numbers = #tpu.dot_dimension_numbers<[1], [0], [0], [1], [0, 0, 1, 1], [], []>} : vector<8x128xf32>, vector<128x128xf32>, vector<8x128xf32> -> vector<8x128xf32>
    %c0_10 = arith.constant 0 : index
    %c0_11 = arith.constant 0 : index
    %108 = vector.load %arg5[%c0_10, %c0_11] : memref<1x128xf32, #tpu.memory_space<vmem>>, vector<1x128xf32>
    %109 = vector.broadcast %108 : vector<1x128xf32> to vector<8x128xf32>
    %110 = arith.addf %107, %109 : vector<8x128xf32>
    %c0_12 = arith.constant 0 : index
    %c0_13 = arith.constant 0 : index
    %111 = vector.load %arg6[%c0_12, %c0_13] : memref<8x128xf32, #tpu.memory_space<vmem>>, vector<8x128xf32>
    tpu.vector_store %arg6[%c0_12, %c0_13], %110 {strides = array<i32>} : memref<8x128xf32, #tpu.memory_space<vmem>>, vector<8x128xf32>,
    return
  }
  func.func @transform_0(%arg0: i32) -> (i32, i32) {
    %c0_i32 = arith.constant 0 : i32
    %c0_i32_0 = arith.constant 0 : i32
    return %arg0, %c0_i32 : i32, i32
  }
  func.func @transform_1(%arg0: i32) -> (i32, i32) {
    %c0_i32 = arith.constant 0 : i32
    %c0_i32_0 = arith.constant 0 : i32
    %c0_i32_1 = arith.constant 0 : i32
    return %c0_i32, %c0_i32_0 : i32, i32
  }
  func.func @transform_2(%arg0: i32) -> (i32, i32) {
    %c0_i32 = arith.constant 0 : i32
    %c0_i32_0 = arith.constant 0 : i32
    %c0_i32_1 = arith.constant 0 : i32
    return %c0_i32, %c0_i32_0 : i32, i32
  }
  func.func @transform_3(%arg0: i32) -> (i32, i32) {
    %c0_i32 = arith.constant 0 : i32
    %c0_i32_0 = arith.constant 0 : i32
    %c0_i32_1 = arith.constant 0 : i32
    return %c0_i32, %c0_i32_0 : i32, i32
  }
  func.func @transform_4(%arg0: i32) -> (i32, i32) {
    %c0_i32 = arith.constant 0 : i32
    %c0_i32_0 = arith.constant 0 : i32
    %c0_i32_1 = arith.constant 0 : i32
    return %c0_i32, %c0_i32_0 : i32, i32
  }
  func.func @transform_5(%arg0: i32) -> (i32, i32) {
    %c0_i32 = arith.constant 0 : i32
    %c0_i32_0 = arith.constant 0 : i32
    return %arg0, %c0_i32 : i32, i32
  }
}

module attributes {stable_mosaic.version = 11 : i64} {
  func.func @classifier_kernel(%arg0: i32, %arg1: memref<8x16xi32, #tpu.memory_space<vmem>>, %arg2: memref<256x128xf32, #tpu.memory_space<vmem>>, %arg3: memref<1x128xf32, #tpu.memory_space<vmem>>, %arg4: memref<128x128xf32, #tpu.memory_space<vmem>>, %arg5: memref<1x128xf32, #tpu.memory_space<vmem>>, %arg6: memref<8x128xf32, #tpu.memory_space<vmem>>) attributes {dimension_semantics = [#tpu.dimension_semantics<parallel>], iteration_bounds = array<i64: 1>, scalar_prefetch = 0 : i64, scratch_operands = 0 : i64, tpu.core_type = #tpu.core_type<tc>, window_params = [{transform_indices = @transform_0, window_bounds = array<i64: 8, 16>}, {pipeline_mode = #tpu.pipeline_mode<synchronous>, transform_indices = @transform_1, window_bounds = array<i64: 256, 128>}, {pipeline_mode = #tpu.pipeline_mode<synchronous>, transform_indices = @transform_2, window_bounds = array<i64: 1, 128>}, {pipeline_mode = #tpu.pipeline_mode<synchronous>, transform_indices = @transform_3, window_bounds = array<i64: 128, 128>}, {pipeline_mode = #tpu.pipeline_mode<synchronous>, transform_indices = @transform_4, window_bounds = array<i64: 1, 128>}, {transform_indices = @transform_5, window_bounds = array<i64: 8, 128>}]} {
    %c0 = arith.constant 0 : index
    %c0_0 = arith.constant 0 : index
    %0 = vector.load %arg1[%c0, %c0_0] : memref<8x16xi32, #tpu.memory_space<vmem>>, vector<8x16xi32>
    %1 = tpu.iota {dimensions = array<i32: 1>} : vector<8x256xi32>
    %cst = arith.constant 0.000000e+00 : f32
    %2 = vector.broadcast %cst : f32 to vector<8x256xf32>
    %3 = vector.extract_strided_slice %0 {offsets = [0, 0], sizes = [8, 1], strides = [1, 1]} : vector<8x16xi32> to vector<8x1xi32>
    %4 = vector.broadcast %3 : vector<8x1xi32> to vector<8x256xi32>
    %5 = arith.cmpi eq, %4, %1 : vector<8x256xi32>
    %6 = arith.extui %5 : vector<8x256xi1> to vector<8x256xi32>
    %7 = arith.sitofp %6 : vector<8x256xi32> to vector<8x256xf32>
    %8 = arith.addf %2, %7 : vector<8x256xf32>
    %9 = vector.extract_strided_slice %0 {offsets = [0, 1], sizes = [8, 1], strides = [1, 1]} : vector<8x16xi32> to vector<8x1xi32>
    %10 = vector.broadcast %9 : vector<8x1xi32> to vector<8x256xi32>
    %11 = arith.cmpi eq, %10, %1 : vector<8x256xi32>
    %12 = arith.extui %11 : vector<8x256xi1> to vector<8x256xi32>
    %13 = arith.sitofp %12 : vector<8x256xi32> to vector<8x256xf32>
    %14 = arith.addf %8, %13 : vector<8x256xf32>
    %15 = vector.extract_strided_slice %0 {offsets = [0, 2], sizes = [8, 1], strides = [1, 1]} : vector<8x16xi32> to vector<8x1xi32>
    %16 = vector.broadcast %15 : vector<8x1xi32> to vector<8x256xi32>
    %17 = arith.cmpi eq, %16, %1 : vector<8x256xi32>
    %18 = arith.extui %17 : vector<8x256xi1> to vector<8x256xi32>
    %19 = arith.sitofp %18 : vector<8x256xi32> to vector<8x256xf32>
    %20 = arith.addf %14, %19 : vector<8x256xf32>
    %21 = vector.extract_strided_slice %0 {offsets = [0, 3], sizes = [8, 1], strides = [1, 1]} : vector<8x16xi32> to vector<8x1xi32>
    %22 = vector.broadcast %21 : vector<8x1xi32> to vector<8x256xi32>
    %23 = arith.cmpi eq, %22, %1 : vector<8x256xi32>
    %24 = arith.extui %23 : vector<8x256xi1> to vector<8x256xi32>
    %25 = arith.sitofp %24 : vector<8x256xi32> to vector<8x256xf32>
    %26 = arith.addf %20, %25 : vector<8x256xf32>
    %27 = vector.extract_strided_slice %0 {offsets = [0, 4], sizes = [8, 1], strides = [1, 1]} : vector<8x16xi32> to vector<8x1xi32>
    %28 = vector.broadcast %27 : vector<8x1xi32> to vector<8x256xi32>
    %29 = arith.cmpi eq, %28, %1 : vector<8x256xi32>
    %30 = arith.extui %29 : vector<8x256xi1> to vector<8x256xi32>
    %31 = arith.sitofp %30 : vector<8x256xi32> to vector<8x256xf32>
    %32 = arith.addf %26, %31 : vector<8x256xf32>
    %33 = vector.extract_strided_slice %0 {offsets = [0, 5], sizes = [8, 1], strides = [1, 1]} : vector<8x16xi32> to vector<8x1xi32>
    %34 = vector.broadcast %33 : vector<8x1xi32> to vector<8x256xi32>
    %35 = arith.cmpi eq, %34, %1 : vector<8x256xi32>
    %36 = arith.extui %35 : vector<8x256xi1> to vector<8x256xi32>
    %37 = arith.sitofp %36 : vector<8x256xi32> to vector<8x256xf32>
    %38 = arith.addf %32, %37 : vector<8x256xf32>
    %39 = vector.extract_strided_slice %0 {offsets = [0, 6], sizes = [8, 1], strides = [1, 1]} : vector<8x16xi32> to vector<8x1xi32>
    %40 = vector.broadcast %39 : vector<8x1xi32> to vector<8x256xi32>
    %41 = arith.cmpi eq, %40, %1 : vector<8x256xi32>
    %42 = arith.extui %41 : vector<8x256xi1> to vector<8x256xi32>
    %43 = arith.sitofp %42 : vector<8x256xi32> to vector<8x256xf32>
    %44 = arith.addf %38, %43 : vector<8x256xf32>
    %45 = vector.extract_strided_slice %0 {offsets = [0, 7], sizes = [8, 1], strides = [1, 1]} : vector<8x16xi32> to vector<8x1xi32>
    %46 = vector.broadcast %45 : vector<8x1xi32> to vector<8x256xi32>
    %47 = arith.cmpi eq, %46, %1 : vector<8x256xi32>
    %48 = arith.extui %47 : vector<8x256xi1> to vector<8x256xi32>
    %49 = arith.sitofp %48 : vector<8x256xi32> to vector<8x256xf32>
    %50 = arith.addf %44, %49 : vector<8x256xf32>
    %51 = vector.extract_strided_slice %0 {offsets = [0, 8], sizes = [8, 1], strides = [1, 1]} : vector<8x16xi32> to vector<8x1xi32>
    %52 = vector.broadcast %51 : vector<8x1xi32> to vector<8x256xi32>
    %53 = arith.cmpi eq, %52, %1 : vector<8x256xi32>
    %54 = arith.extui %53 : vector<8x256xi1> to vector<8x256xi32>
    %55 = arith.sitofp %54 : vector<8x256xi32> to vector<8x256xf32>
    %56 = arith.addf %50, %55 : vector<8x256xf32>
    %57 = vector.extract_strided_slice %0 {offsets = [0, 9], sizes = [8, 1], strides = [1, 1]} : vector<8x16xi32> to vector<8x1xi32>
    %58 = vector.broadcast %57 : vector<8x1xi32> to vector<8x256xi32>
    %59 = arith.cmpi eq, %58, %1 : vector<8x256xi32>
    %60 = arith.extui %59 : vector<8x256xi1> to vector<8x256xi32>
    %61 = arith.sitofp %60 : vector<8x256xi32> to vector<8x256xf32>
    %62 = arith.addf %56, %61 : vector<8x256xf32>
    %63 = vector.extract_strided_slice %0 {offsets = [0, 10], sizes = [8, 1], strides = [1, 1]} : vector<8x16xi32> to vector<8x1xi32>
    %64 = vector.broadcast %63 : vector<8x1xi32> to vector<8x256xi32>
    %65 = arith.cmpi eq, %64, %1 : vector<8x256xi32>
    %66 = arith.extui %65 : vector<8x256xi1> to vector<8x256xi32>
    %67 = arith.sitofp %66 : vector<8x256xi32> to vector<8x256xf32>
    %68 = arith.addf %62, %67 : vector<8x256xf32>
    %69 = vector.extract_strided_slice %0 {offsets = [0, 11], sizes = [8, 1], strides = [1, 1]} : vector<8x16xi32> to vector<8x1xi32>
    %70 = vector.broadcast %69 : vector<8x1xi32> to vector<8x256xi32>
    %71 = arith.cmpi eq, %70, %1 : vector<8x256xi32>
    %72 = arith.extui %71 : vector<8x256xi1> to vector<8x256xi32>
    %73 = arith.sitofp %72 : vector<8x256xi32> to vector<8x256xf32>
    %74 = arith.addf %68, %73 : vector<8x256xf32>
    %75 = vector.extract_strided_slice %0 {offsets = [0, 12], sizes = [8, 1], strides = [1, 1]} : vector<8x16xi32> to vector<8x1xi32>
    %76 = vector.broadcast %75 : vector<8x1xi32> to vector<8x256xi32>
    %77 = arith.cmpi eq, %76, %1 : vector<8x256xi32>
    %78 = arith.extui %77 : vector<8x256xi1> to vector<8x256xi32>
    %79 = arith.sitofp %78 : vector<8x256xi32> to vector<8x256xf32>
    %80 = arith.addf %74, %79 : vector<8x256xf32>
    %81 = vector.extract_strided_slice %0 {offsets = [0, 13], sizes = [8, 1], strides = [1, 1]} : vector<8x16xi32> to vector<8x1xi32>
    %82 = vector.broadcast %81 : vector<8x1xi32> to vector<8x256xi32>
    %83 = arith.cmpi eq, %82, %1 : vector<8x256xi32>
    %84 = arith.extui %83 : vector<8x256xi1> to vector<8x256xi32>
    %85 = arith.sitofp %84 : vector<8x256xi32> to vector<8x256xf32>
    %86 = arith.addf %80, %85 : vector<8x256xf32>
    %87 = vector.extract_strided_slice %0 {offsets = [0, 14], sizes = [8, 1], strides = [1, 1]} : vector<8x16xi32> to vector<8x1xi32>
    %88 = vector.broadcast %87 : vector<8x1xi32> to vector<8x256xi32>
    %89 = arith.cmpi eq, %88, %1 : vector<8x256xi32>
    %90 = arith.extui %89 : vector<8x256xi1> to vector<8x256xi32>
    %91 = arith.sitofp %90 : vector<8x256xi32> to vector<8x256xf32>
    %92 = arith.addf %86, %91 : vector<8x256xf32>
    %93 = vector.extract_strided_slice %0 {offsets = [0, 15], sizes = [8, 1], strides = [1, 1]} : vector<8x16xi32> to vector<8x1xi32>
    %94 = vector.broadcast %93 : vector<8x1xi32> to vector<8x256xi32>
    %95 = arith.cmpi eq, %94, %1 : vector<8x256xi32>
    %96 = arith.extui %95 : vector<8x256xi1> to vector<8x256xi32>
    %97 = arith.sitofp %96 : vector<8x256xi32> to vector<8x256xf32>
    %98 = arith.addf %92, %97 : vector<8x256xf32>
    %c0_1 = arith.constant 0 : index
    %c0_2 = arith.constant 0 : index
    %99 = vector.load %arg2[%c0_1, %c0_2] : memref<256x128xf32, #tpu.memory_space<vmem>>, vector<256x128xf32>
    %cst_3 = arith.constant dense<0.000000e+00> : vector<8x128xf32>
    %100 = tpu.matmul %98, %99, %cst_3 {dimension_numbers = #tpu.dot_dimension_numbers<[1], [0], [0], [1], [0, 0, 1, 1], [], []>} : vector<8x256xf32>, vector<256x128xf32>, vector<8x128xf32> -> vector<8x128xf32>
    %c0_4 = arith.constant 0 : index
    %c0_5 = arith.constant 0 : index
    %101 = vector.load %arg3[%c0_4, %c0_5] : memref<1x128xf32, #tpu.memory_space<vmem>>, vector<1x128xf32>
    %102 = vector.broadcast %101 : vector<1x128xf32> to vector<8x128xf32>
    %103 = arith.addf %100, %102 : vector<8x128xf32>
    %cst_6 = arith.constant 0.000000e+00 : f32
    %104 = vector.broadcast %cst_6 : f32 to vector<8x128xf32>
    %105 = arith.maximumf %103, %104 : vector<8x128xf32>
    %c0_7 = arith.constant 0 : index
    %c0_8 = arith.constant 0 : index
    %106 = vector.load %arg4[%c0_7, %c0_8] : memref<128x128xf32, #tpu.memory_space<vmem>>, vector<128x128xf32>
    %cst_9 = arith.constant dense<0.000000e+00> : vector<8x128xf32>
    %107 = tpu.matmul %105, %106, %cst_9 {dimension_numbers = #tpu.dot_dimension_numbers<[1], [0], [0], [1], [0, 0, 1, 1], [], []>} : vector<8x128xf32>, vector<128x128xf32>, vector<8x128xf32> -> vector<8x128xf32>
    %c0_10 = arith.constant 0 : index
    %c0_11 = arith.constant 0 : index
    %108 = vector.load %arg5[%c0_10, %c0_11] : memref<1x128xf32, #tpu.memory_space<vmem>>, vector<1x128xf32>
    %109 = vector.broadcast %108 : vector<1x128xf32> to vector<8x128xf32>
    %110 = arith.addf %107, %109 : vector<8x128xf32>
    %c0_12 = arith.constant 0 : index
    %c0_13 = arith.constant 0 : index
    %111 = vector.load %arg6[%c0_12, %c0_13] : memref<8x128xf32, #tpu.memory_space<vmem>>, vector<8x128xf32>
    tpu.vector_store %arg6[%c0_12, %c0_13], %110 {strides = array<i32>} : memref<8x128xf32, #tpu.memory_space<vmem>>, vector<8x128xf32>,
    return
  }
  func.func @transform_0(%arg0: i32) -> (i32, i32) {
    %c0_i32 = arith.constant 0 : i32
    %c0_i32_0 = arith.constant 0 : i32
    return %arg0, %c0_i32 : i32, i32
  }
  func.func @transform_1(%arg0: i32) -> (i32, i32) {
    %c0_i32 = arith.constant 0 : i32
    %c0_i32_0 = arith.constant 0 : i32
    %c0_i32_1 = arith.constant 0 : i32
    return %c0_i32, %c0_i32_0 : i32, i32
  }
  func.func @transform_2(%arg0: i32) -> (i32, i32) {
    %c0_i32 = arith.constant 0 : i32
    %c0_i32_0 = arith.constant 0 : i32
    %c0_i32_1 = arith.constant 0 : i32
    return %c0_i32, %c0_i32_0 : i32, i32
  }
  func.func @transform_3(%arg0: i32) -> (i32, i32) {
    %c0_i32 = arith.constant 0 : i32
    %c0_i32_0 = arith.constant 0 : i32
    %c0_i32_1 = arith.constant 0 : i32
    return %c0_i32, %c0_i32_0 : i32, i32
  }
  func.func @transform_4(%arg0: i32) -> (i32, i32) {
    %c0_i32 = arith.constant 0 : i32
    %c0_i32_0 = arith.constant 0 : i32
    %c0_i32_1 = arith.constant 0 : i32
    return %c0_i32, %c0_i32_0 : i32, i32
  }
  func.func @transform_5(%arg0: i32) -> (i32, i32) {
    %c0_i32 = arith.constant 0 : i32
    %c0_i32_0 = arith.constant 0 : i32
    return %arg0, %c0_i32 : i32, i32
  }
}

</mosaic_0001>

<bundles_post_ra>
// kernel: tpu_custom_call.1
= control target key start
LH: loop header
LB: loop body
LE: loop exit
PB: predicated region body
PF: predicated region fallthrough
CT: control target
= control target key end

     0   :  { %10 = vsyncpa [#allocation3], 0  ;;  %s716_s0 = inlined_call_operand.hbm [shape: s32[8,16], index: 0, kind: input, shape index: {}]   ;;  %s717_s1 = inlined_call_operand.hbm [shape: f32[256,128], index: 1, kind: input, shape index: {}]   ;;  %s718_s2 = inlined_call_operand.vmem [shape: f32[1,128], index: 2, kind: input, shape index: {}]   ;;  %s719_s3 = inlined_call_operand.hbm [shape: f32[128,128], index: 3, kind: input, shape index: {}]   ;;  %s720_s4 = inlined_call_operand.vmem [shape: f32[1,128], index: 4, kind: input, shape index: {}]   ;;  %s721_s5 = inlined_call_operand.hbm [shape: f32[8,128], index: 5, kind: output, shape index: {}]  }
   0x1   :  { %11 = vsyncpa [#allocation6], 0  ;;  %s28_s20 = sshll.u32 %s717_s1, 4  ;;  %s29_s20 = int_to_ptr.hbm [resolvable:$true] %s28_s20 }
   0x2   :  { %12 = vsyncpa [#allocation4], 0  ;;  %s558_s21 = smov [#allocation5]   ;;  %s18_s25 = sshll.u32 %s716_s0, 4  ;;  %s19_s25 = int_to_ptr.hbm [resolvable:$true] %s18_s25 }
   0x3   :  { %s30_s22 = sshll.u32 %s558_s21, 4  ;;  %s559_s26 = smov 128   ;;  %s31_s22 = int_to_ptr.vmem [resolvable:$true] %s30_s22 }
   0x4   :  { %s560_s27 = smov 8   ;;  %s561_s28 = smov [#allocation2]  }
   0x5   :  { %36 = dma.hbm_to_vmem [thread:$0]  %s29_s20, 4096, %s31_s22, [#allocation6], %s559_s26, %s559_s26, %s560_s27  }
   0x6   :  { %s20_s29 = sshll.u32 %s561_s28, 4  ;;  %s43_s7 = sshll.u32 %s719_s3, 4  ;;  %s21_s29 = int_to_ptr.vmem [resolvable:$true] %s20_s29  ;;  %s44_s7 = int_to_ptr.hbm [resolvable:$true] %s43_s7 }
   0x7   :  { %23 = dma.hbm_to_vmem [thread:$0]  %s19_s25, 128, %s21_s29, [#allocation3]  }
   0x8   :  { %s562_s1 = smov [#allocation7]  }
   0x9   :  { %s45_s8 = sshll.u32 %s562_s1, 4  ;;  %s46_s8 = int_to_ptr.vmem [resolvable:$true] %s45_s8 }
   0xa   :  { %51 = dma.hbm_to_vmem [thread:$0]  %s44_s7, 2048, %s46_s8, [#allocation6], %s559_s26, %s559_s26, %s560_s27  }
   0xb   :  { %552 = dma.done.wait [#allocation3], 128  }
   0xc   :  { %553 = vsyncadd [#allocation3], 4294967168 }
   0xd   :  { %554 = dma.done.wait [#allocation6], 6144  }
   0xe   :  { %555 = vsyncadd [#allocation6], 4294961152  ;;  %v563_v0 = vmov 2   ;;  %v564_v1 = vmov 0   ;;  %v565_v2 = vmov 4   ;;  %v66_v3 = vld [vmem:[#allocation2] sm:$0xff]  ;;  %v67_v26 = vlaneseq }
   0xf   :  { %439 = vset.pattern.permute.xlu1 %v563_v0  ;;  %437 = vset.pattern.permute.xlu0 %v564_v1  ;;  %v566_v4 = vmov 3   ;;  %v567_v5 = vmov 1   ;;  %v568_v6 = vmov 5   ;;  %v569_v7 = vmov 6   ;;  %v261_v17 = vld [vmem:[#allocation5 + $0x78] sm:$0xff]  ;;  %v260_v19 = vld [vmem:[#allocation5 + $0x70] sm:$0xff] }
  0x10   :  { %441 = vset.pattern.permute.xlu2 %v565_v2  ;;  %93 = vperm.xlu1 %439, %v66_v3   ;;  %v570_v8 = vmov 8   ;;  %v571_v9 = vmov 7   ;;  %v572_v10 = vmov 9   ;;  %v573_v11 = vmov 13   ;;  %v277_v18 = vld [vmem:[#allocation5 + $0xf8] sm:$0xff]  ;;  %v276_v20 = vld [vmem:[#allocation5 + $0xf0] sm:$0xff] }
  0x11   :  { %71 = vperm.xlu0 %437, %v66_v3   ;;  %115 = vperm.xlu2 %441, %v66_v3   ;;  %v574_v12 = vmov 10   ;;  %v575_v13 = vmov 11   ;;  %v576_v14 = vmov 15   ;;  %v577_v15 = vmov 12   ;;  %v259_v22 = vld [vmem:[#allocation5 + $0x68] sm:$0xff]  ;;  %v258_v24 = vld [vmem:[#allocation5 + $0x60] sm:$0xff] }
  0x12   :  { %v578_v16 = vmov 14   ;;  %282 = vmatpush.msra.mxu0 %v261_v17  ;;  %302 = vmatpush.msra.mxu1 %v277_v18  ;;  %v275_v23 = vld [vmem:[#allocation5 + $0xe8] sm:$0xff]  ;;  %v274_v25 = vld [vmem:[#allocation5 + $0xe0] sm:$0xff]  ;;  %v257_v27 = vld [vmem:[#allocation5 + $0x58] sm:$0xff]  ;;  %v622_v31 = vand.u32 127, %v67_v26  ;;  %v579_v46 = vmov 0.0  }
  0x13   :  { %v273_v28 = vld [vmem:[#allocation5 + $0xd8] sm:$0xff]  ;;  %v256_v29 = vld [vmem:[#allocation5 + $0x50] sm:$0xff]  ;;  %v255_v34 = vld [vmem:[#allocation5 + $0x48] sm:$0xff]  ;;  %s580_s11 = smov [#allocation8]   ;;  %s371_s15 = sshll.u32 %s721_s5, 4  ;;  %s372_s15 = int_to_ptr.hbm [resolvable:$true] %s371_s15 }
  0x14   :  { %283 = vmatpush.msra.mxu0 %v260_v19  ;;  %303 = vmatpush.msra.mxu1 %v276_v20  ;;  %v272_v30 = vld [vmem:[#allocation5 + $0xd0] sm:$0xff]  ;;  %v271_v35 = vld [vmem:[#allocation5 + $0xc8] sm:$0xff]  ;;  %v254_v36 = vld [vmem:[#allocation5 + $0x40] sm:$0xff]  ;;  %v627_v39 = vadd.s32 128, %v622_v31  ;;  %s369_s12 = sshll.u32 %s580_s11, 4  ;;  %s370_s12 = int_to_ptr.vmem [resolvable:$true] %s369_s12 }
  0x15   :  { %v270_v38 = vld [vmem:[#allocation5 + $0xc0] sm:$0xff]  ;;  %v253_v40 = vld [vmem:[#allocation5 + $0x38] sm:$0xff]  ;;  %v252_v42 = vld [vmem:[#allocation5 + $0x30] sm:$0xff] }
  0x16   :  { %284 = vmatpush.msra.mxu0 %v259_v22  ;;  %304 = vmatpush.msra.mxu1 %v275_v23  ;;  %v269_v41 = vld [vmem:[#allocation5 + $0xb8] sm:$0xff]  ;;  %v268_v43 = vld [vmem:[#allocation5 + $0xb0] sm:$0xff]  ;;  %v251_v44 = vld [vmem:[#allocation5 + $0x28] sm:$0xff] }
  0x17   :  { %v267_v45 = vld [vmem:[#allocation5 + $0xa8] sm:$0xff]  ;;  %v250_v51 = vld [vmem:[#allocation5 + $0x20] sm:$0xff]  ;;  %v249_v56 = vld [vmem:[#allocation5 + $0x18] sm:$0xff] }
  0x18   :  { %440 = vset.pattern.permute.xlu1 %v566_v4  ;;  %285 = vmatpush.msra.mxu0 %v258_v24  ;;  %v266_v52 = vld [vmem:[#allocation5 + $0xa0] sm:$0xff]  ;;  %v265_v57 = vld [vmem:[#allocation5 + $0x98] sm:$0xff]  ;;  %v248_v0 = vld [vmem:[#allocation5 + $0x10] sm:$0xff] }
  0x19   :  { %438 = vset.pattern.permute.xlu0 %v567_v5  ;;  %104 = vperm.xlu1 %440, %v66_v3   ;;  %v264_v1 = vld [vmem:[#allocation5 + $0x90] sm:$0xff] }
  0x1a   :  { %82 = vperm.xlu0 %438, %v66_v3   ;;  %442 = vset.pattern.permute.xlu2 %v568_v6  ;;  %v247_v6 = vld [vmem:[#allocation5 + $0x8] sm:$0xff]  ;;  %v337_v22 = vld [vmem:[#allocation7 + $0x70] sm:$0xff] }
  0x1b   :  { %126 = vperm.xlu2 %442, %v66_v3   ;;  %305 = vmatpush.msra.mxu1 %v274_v25  ;;  %v336_v25 = vld [vmem:[#allocation7 + $0x68] sm:$0xff] }
  0x1c   :  { %286 = vmatpush.msra.mxu0 %v257_v27 }
  0x1d   :  { %306 = vmatpush.msra.mxu1 %v273_v28 }
  0x1e   :  { %287 = vmatpush.msra.mxu0 %v256_v29 }
  0x1f   :  { %307 = vmatpush.msra.mxu1 %v272_v30  ;;  %v335_v30 = vld [vmem:[#allocation7 + $0x60] sm:$0xff] }
  0x20   :  { %288 = vmatpush.msra.mxu0 %v255_v34 }
  0x21   :  { %443 = vset.pattern.permute.xlu1 %v569_v7  ;;  %308 = vmatpush.msra.mxu1 %v271_v35  ;;  %v263_v7 = vld [vmem:[#allocation5 + $0x88] sm:$0xff] }
  0x22   :  { %445 = vset.pattern.permute.xlu0 %v570_v8  ;;  %137 = vperm.xlu1 %443, %v66_v3   ;;  %v246_v8 = vld [vmem:[#allocation5] sm:$0xff] }
  0x23   :  { %159 = vperm.xlu0 %445, %v66_v3   ;;  %444 = vset.pattern.permute.xlu2 %v571_v9 }
  0x24   :  { %148 = vperm.xlu2 %444, %v66_v3   ;;  %289 = vmatpush.msra.mxu0 %v254_v36 }
  0x25   :  { %309 = vmatpush.msra.mxu1 %v270_v38  ;;  %v333_v38 = vld [vmem:[#allocation7 + $0x50] sm:$0xff] }
  0x26   :  { %290 = vmatpush.msra.mxu0 %v253_v40 }
  0x27   :  { %310 = vmatpush.msra.mxu1 %v269_v41 }
  0x28   :  { %291 = vmatpush.msra.mxu0 %v252_v42  ;;  %v332_v42 = vld [vmem:[#allocation7 + $0x48] sm:$0xff] }
  0x29   :  { %311 = vmatpush.msra.mxu1 %v268_v43 }
  0x2a   :  { %446 = vset.pattern.permute.xlu1 %v572_v10  ;;  %292 = vmatpush.msra.mxu0 %v251_v44 }
  0x2b   :  { %450 = vset.pattern.permute.xlu0 %v573_v11  ;;  %170 = vperm.xlu1 %446, %v66_v3   ;;  %v262_v11 = vld [vmem:[#allocation5 + $0x80] sm:$0xff] }
  0x2c   :  { %214 = vperm.xlu0 %450, %v66_v3   ;;  %447 = vset.pattern.permute.xlu2 %v574_v12 }
  0x2d   :  { %181 = vperm.xlu2 %447, %v66_v3   ;;  %312 = vmatpush.msra.mxu1 %v267_v45 }
  0x2e   :  { %293 = vmatpush.msra.mxu0 %v250_v51 }
  0x2f   :  { %313 = vmatpush.msra.mxu1 %v266_v52  ;;  %v330_v52 = vld [vmem:[#allocation7 + $0x38] sm:$0xff] }
  0x30   :  { %294 = vmatpush.msra.mxu0 %v249_v56 }
  0x31   :  { %314 = vmatpush.msra.mxu1 %v265_v57 }
  0x32   :  { %295 = vmatpush.msra.mxu0 %v248_v0 }
  0x33   :  { %448 = vset.pattern.permute.xlu1 %v575_v13  ;;  %315 = vmatpush.msra.mxu1 %v264_v1  ;;  %v327_v1 = vld [vmem:[#allocation7 + $0x20] sm:$0xff] }
  0x34   :  { %453 = vset.pattern.permute.xlu0 %v576_v14  ;;  %192 = vperm.xlu1 %448, %v66_v3  }
  0x35   :  { %449 = vset.pattern.permute.xlu2 %v577_v15  ;;  %296 = vmatpush.msra.mxu0 %v247_v6 }
  0x36   :  { %203 = vperm.xlu2 %449, %v66_v3   ;;  %316 = vmatpush.msra.mxu1 %v263_v7 }
  0x37   :  { %297 = vmatpush.msra.mxu0 %v246_v8 }
  0x38   :  { %317 = vmatpush.msra.mxu1 %v262_v11 }
  0x3c   :  { %451 = vset.pattern.permute.xlu1 %v578_v16 }
  0x3d   :  { %225 = vperm.xlu1 %451, %v66_v3  }
  0x3e   :  { %452 = vset.pattern.permute.xlu2 %v576_v14 }
  0x3f   :  { %236 = vperm.xlu2 %452, %v66_v3  }
  0x6b   :  { %v620_v21 = vpop.permute.xlu2 %115 }
  0x6c   :  { %vm117_vm8 = vcmp.eq.s32.totalorder %v620_v21, %v622_v31  ;;  %vm118_vm9 = vcmp.eq.s32.totalorder %v620_v21, %v627_v39  ;;  %v338_v21 = vld [vmem:[#allocation7 + $0x78] sm:$0xff] }
  0x6d   :  { %v390_v9 = vsel %vm117_vm8, 1.0, %v579_v46  ;;  %v391_v10 = vsel %vm118_vm9, 1.0, %v579_v46  ;;  %343 = vmatpush.msra.mxu2 %v338_v21 }
  0x6f   :  { %344 = vmatpush.msra.mxu2 %v337_v22 }
  0x71   :  { %345 = vmatpush.msra.mxu2 %v336_v25  ;;  %v455_v25 = vld [vmem:[%s720_s4] ss:$0 sm:$0xff] }
  0x73   :  { %346 = vmatpush.msra.mxu2 %v335_v30 }
  0x75   :  { %v624_v37 = vpop.permute.xlu2 %126 }
  0x76   :  { %vm128_vm10 = vcmp.eq.s32.totalorder %v624_v37, %v622_v31  ;;  %vm129_vm11 = vcmp.eq.s32.totalorder %v624_v37, %v627_v39 }
  0x77   :  { %v392_v15 = vsel %vm128_vm10, 1.0, %v579_v46  ;;  %v393_v16 = vsel %vm129_vm11, 1.0, %v579_v46 }
  0x7e   :  { %v149_v55 = vpop.permute.xlu2 %148 }
  0x7f   :  { %vm150_vm14 = vcmp.eq.s32.totalorder %v149_v55, %v622_v31  ;;  %vm151_vm15 = vcmp.eq.s32.totalorder %v149_v55, %v627_v39 }
  0x80   :  { %v396_v28 = vsel %vm150_vm14, 1.0, %v579_v46  ;;  %v397_v29 = vsel %vm151_vm15, 1.0, %v579_v46 }
  0x82   :  { %v94_v32 = vpop.permute.xlu1 %93 }
  0x83   :  { %v72_v33 = vpop.permute.xlu0 %71  ;;  %vm95_vm2 = vcmp.eq.s32.totalorder %v94_v32, %v622_v31  ;;  %vm96_vm3 = vcmp.eq.s32.totalorder %v94_v32, %v627_v39  ;;  %v334_v32 = vld [vmem:[#allocation7 + $0x58] sm:$0xff] }
  0x84   :  { %vm73_vm0 = vcmp.eq.s32.totalorder %v72_v33, %v622_v31  ;;  %vm74_vm1 = vcmp.eq.s32.totalorder %v72_v33, %v627_v39  ;;  %v386_v60 = vsel %vm95_vm2, 1.0, %v579_v46  ;;  %v387_v61 = vsel %vm96_vm3, 1.0, %v579_v46  ;;  %347 = vmatpush.msra.mxu2 %v334_v32 }
  0x85   :  { %v382_v47 = vsel %vm73_vm0, 1.0, %v579_v46  ;;  %v383_v48 = vsel %vm74_vm1, 1.0, %v579_v46 }
  0x86   :  { %348 = vmatpush.msra.mxu2 %v333_v38 }
  0x87   :  { %v182_v23 = vpop.permute.xlu2 %181 }
  0x88   :  { %349 = vmatpush.msra.mxu2 %v332_v42 }
  0x8b   :  { %v105_v49 = vpop.permute.xlu1 %104 }
  0x8c   :  { %v83_v50 = vpop.permute.xlu0 %82  ;;  %vm106_vm6 = vcmp.eq.s32.totalorder %v105_v49, %v622_v31  ;;  %vm107_vm7 = vcmp.eq.s32.totalorder %v105_v49, %v627_v39 }
  0x8d   :  { %vm84_vm4 = vcmp.eq.s32.totalorder %v83_v50, %v622_v31  ;;  %vm85_vm5 = vcmp.eq.s32.totalorder %v83_v50, %v627_v39  ;;  %v388_v2 = vsel %vm106_vm6, 1.0, %v579_v46  ;;  %v389_v3 = vsel %vm107_vm7, 1.0, %v579_v46 }
  0x8e   :  { %v384_v53 = vsel %vm84_vm4, 1.0, %v579_v46  ;;  %v385_v54 = vsel %vm85_vm5, 1.0, %v579_v46  ;;  %vm183_vm4 = vcmp.eq.s32.totalorder %v182_v23, %v622_v31  ;;  %vm184_vm5 = vcmp.eq.s32.totalorder %v182_v23, %v627_v39 }
  0x8f   :  { %v90_v58 = vadd.f32 %v384_v53, %v382_v47  ;;  %v91_v59 = vadd.f32 %v385_v54, %v383_v48  ;;  %v331_v47 = vld [vmem:[#allocation7 + $0x40] sm:$0xff]  ;;  %v402_v50 = vsel %vm183_vm4, 1.0, %v579_v46  ;;  %v403_v51 = vsel %vm184_vm5, 1.0, %v579_v46  ;;  %v329_v54 = vld [vmem:[#allocation7 + $0x30] sm:$0xff] }
  0x90   :  { %v204_v45 = vpop.permute.xlu2 %203  ;;  %350 = vmatpush.msra.mxu2 %v331_v47 }
  0x91   :  { %v101_v62 = vadd.f32 %v386_v60, %v90_v58  ;;  %v102_v63 = vadd.f32 %v387_v61, %v91_v59  ;;  %vm205_vm6 = vcmp.eq.s32.totalorder %v204_v45, %v622_v31  ;;  %vm206_vm7 = vcmp.eq.s32.totalorder %v204_v45, %v627_v39  ;;  %v328_v60 = vld [vmem:[#allocation7 + $0x28] sm:$0xff] }
  0x92   :  { %351 = vmatpush.msra.mxu2 %v330_v52  ;;  %v407_v0 = vsel %vm206_vm7, 1.0, %v579_v46 }
  0x93   :  { %v112_v4 = vadd.f32 %v388_v2, %v101_v62  ;;  %v113_v5 = vadd.f32 %v389_v3, %v102_v63  ;;  %v406_v63 = vsel %vm205_vm6, 1.0, %v579_v46 }
  0x94   :  { %v138_v14 = vpop.permute.xlu1 %137  ;;  %352 = vmatpush.msra.mxu2 %v329_v54 }
  0x95   :  { %v123_v12 = vadd.f32 %v390_v9, %v112_v4  ;;  %v124_v13 = vadd.f32 %v391_v10, %v113_v5  ;;  %vm139_vm12 = vcmp.eq.s32.totalorder %v138_v14, %v622_v31  ;;  %vm140_vm13 = vcmp.eq.s32.totalorder %v138_v14, %v627_v39  ;;  %v160_v24 = vpop.permute.xlu0 %159 }
  0x96   :  { %v394_v19 = vsel %vm139_vm12, 1.0, %v579_v46  ;;  %v395_v20 = vsel %vm140_vm13, 1.0, %v579_v46  ;;  %vm161_vm0 = vcmp.eq.s32.totalorder %v160_v24, %v622_v31  ;;  %vm162_vm1 = vcmp.eq.s32.totalorder %v160_v24, %v627_v39  ;;  %353 = vmatpush.msra.mxu2 %v328_v60 }
  0x97   :  { %v134_v17 = vadd.f32 %v392_v15, %v123_v12  ;;  %v135_v18 = vadd.f32 %v393_v16, %v124_v13  ;;  %v398_v36 = vsel %vm161_vm0, 1.0, %v579_v46  ;;  %v399_v37 = vsel %vm162_vm1, 1.0, %v579_v46 }
  0x98   :  { %354 = vmatpush.msra.mxu2 %v327_v1 }
  0x99   :  { %v145_v26 = vadd.f32 %v394_v19, %v134_v17  ;;  %v146_v27 = vadd.f32 %v395_v20, %v135_v18  ;;  %v237_v2 = vpop.permute.xlu2 %236  ;;  %v326_v18 = vld [vmem:[#allocation7 + $0x18] sm:$0xff]  ;;  %v325_v19 = vld [vmem:[#allocation7 + $0x10] sm:$0xff] }
  0x9a   :  { %vm238_vm12 = vcmp.eq.s32.totalorder %v237_v2, %v622_v31  ;;  %vm239_vm13 = vcmp.eq.s32.totalorder %v237_v2, %v627_v39  ;;  %355 = vmatpush.msra.mxu2 %v326_v18  ;;  %v454_v20 = vld [vmem:[%s718_s2] ss:$0 sm:$0xff] }
  0x9b   :  { %v156_v33 = vadd.f32 %v396_v28, %v145_v26  ;;  %v157_v34 = vadd.f32 %v397_v29, %v146_v27  ;;  %v412_v12 = vsel %vm238_vm12, 1.0, %v579_v46  ;;  %v413_v13 = vsel %vm239_vm13, 1.0, %v579_v46 }
  0x9c   :  { %356 = vmatpush.msra.mxu2 %v325_v19 }
  0x9d   :  { %v171_v35 = vpop.permute.xlu1 %170  ;;  %v167_v43 = vadd.f32 %v398_v36, %v156_v33  ;;  %v168_v44 = vadd.f32 %v399_v37, %v157_v34 }
  0x9e   :  { %vm172_vm2 = vcmp.eq.s32.totalorder %v171_v35, %v622_v31  ;;  %vm173_vm3 = vcmp.eq.s32.totalorder %v171_v35, %v627_v39  ;;  %v215_v57 = vpop.permute.xlu0 %214 }
  0x9f   :  { %v400_v40 = vsel %vm172_vm2, 1.0, %v579_v46  ;;  %v401_v41 = vsel %vm173_vm3, 1.0, %v579_v46  ;;  %vm216_vm10 = vcmp.eq.s32.totalorder %v215_v57, %v622_v31  ;;  %vm217_vm11 = vcmp.eq.s32.totalorder %v215_v57, %v627_v39 }
  0xa0   :  { %v178_v48 = vadd.f32 %v400_v40, %v167_v43  ;;  %v179_v49 = vadd.f32 %v401_v41, %v168_v44  ;;  %v408_v5 = vsel %vm216_vm10, 1.0, %v579_v46  ;;  %v409_v6 = vsel %vm217_vm11, 1.0, %v579_v46 }
  0xa2   :  { %v189_v55 = vadd.f32 %v402_v50, %v178_v48  ;;  %v190_v56 = vadd.f32 %v403_v51, %v179_v49 }
  0xa6   :  { %v193_v53 = vpop.permute.xlu1 %192 }
  0xa7   :  { %vm194_vm8 = vcmp.eq.s32.totalorder %v193_v53, %v622_v31  ;;  %vm195_vm9 = vcmp.eq.s32.totalorder %v193_v53, %v627_v39 }
  0xa8   :  { %v404_v58 = vsel %vm194_vm8, 1.0, %v579_v46  ;;  %v405_v59 = vsel %vm195_vm9, 1.0, %v579_v46 }
  0xa9   :  { %v200_v61 = vadd.f32 %v404_v58, %v189_v55  ;;  %v201_v62 = vadd.f32 %v405_v59, %v190_v56 }
  0xab   :  { %v211_v3 = vadd.f32 %v406_v63, %v200_v61  ;;  %v212_v4 = vadd.f32 %v407_v0, %v201_v62 }
  0xad   :  { %v222_v8 = vadd.f32 %v408_v5, %v211_v3  ;;  %v223_v9 = vadd.f32 %v409_v6, %v212_v4 }
  0xaf   :  { %v226_v7 = vpop.permute.xlu1 %225 }
  0xb0   :  { %vm227_vm14 = vcmp.eq.s32.totalorder %v226_v7, %v622_v31  ;;  %vm228_vm15 = vcmp.eq.s32.totalorder %v226_v7, %v627_v39  ;;  %v324_v31 = vld [vmem:[#allocation7 + $0x8] sm:$0xff]  ;;  %v323_v39 = vld [vmem:[#allocation7] sm:$0xff] }
  0xb1   :  { %v410_v10 = vsel %vm227_vm14, 1.0, %v579_v46  ;;  %v411_v11 = vsel %vm228_vm15, 1.0, %v579_v46  ;;  %357 = vmatpush.msra.mxu2 %v324_v31 }
  0xb2   :  { %v233_v14 = vadd.f32 %v410_v10, %v222_v8  ;;  %v234_v15 = vadd.f32 %v411_v11, %v223_v9 }
  0xb3   :  { %358 = vmatpush.msra.mxu2 %v323_v39 }
  0xb4   :  { %v244_v16 = vadd.f32 %v412_v12, %v233_v14  ;;  %v245_v17 = vadd.f32 %v413_v13, %v234_v15 }
  0xb6   :  { %298 = vmatmul.f32.vlgmr.msra.gmra.mxu0 %v244_v16  ;;  %318 = vmatmul.f32.vlgmr.msra.gmra.mxu1 %v245_v17 }
 0x133   :  { %v299_v21 = vpop.f32.mrf.mxu0  ;;  %v319_v22 = vpop.f32.mrf.mxu1 }
 0x134   :  { %v300_v46 = vadd.f32 %v454_v20, %v299_v21 }
 0x136   :  { %v320_v23 = vadd.f32 %v319_v22, %v300_v46 }
 0x138   :  { %v322_v24 = vmax.f32 %v320_v23, 0.0 }
 0x13a   :  { %359 = vmatmul.f32.vlgmr.msra.gmra.mxu2 %v322_v24 }
 0x1bd   :  { %v360_v26 = vpop.f32.mrf.mxu2 }
 0x1be   :  { %v361_v27 = vadd.f32 %v455_v25, %v360_v26 }
 0x1c0   :  { %363 = vst [vmem:[#allocation8] sm:$0xff] %v361_v27 }
 0x1c1   :  { %374 = dma.vmem_to_hbm [thread:$0]  %s370_s12, 128, %s372_s15, [#allocation4]  }
 0x1c2   :  { %556 = dma.done.wait [#allocation4], 128  }
 0x1c3   :  { %557 = vsyncadd [#allocation4], 4294967168 }
 0x1c4   :  { %379 = vsyncpa [#allocation3], 1 }
 0x1c5   :  { %380 = vsyncpa [#allocation6], 1 }
 0x1c6   :  { %381 = vsyncpa [#allocation4], 1 }

// kernel: tpu_custom_call.1
= control target key start
LH: loop header
LB: loop body
LE: loop exit
PB: predicated region body
PF: predicated region fallthrough
CT: control target
= control target key end

     0   :  { %10 = vsyncpa [#allocation3], 0  ;;  %s716_s0 = inlined_call_operand.hbm [shape: s32[8,16], index: 0, kind: input, shape index: {}]   ;;  %s717_s1 = inlined_call_operand.hbm [shape: f32[256,128], index: 1, kind: input, shape index: {}]   ;;  %s718_s2 = inlined_call_operand.vmem [shape: f32[1,128], index: 2, kind: input, shape index: {}]   ;;  %s719_s3 = inlined_call_operand.hbm [shape: f32[128,128], index: 3, kind: input, shape index: {}]   ;;  %s720_s4 = inlined_call_operand.vmem [shape: f32[1,128], index: 4, kind: input, shape index: {}]   ;;  %s721_s5 = inlined_call_operand.hbm [shape: f32[8,128], index: 5, kind: output, shape index: {}]  }
   0x1   :  { %11 = vsyncpa [#allocation6], 0  ;;  %s28_s20 = sshll.u32 %s717_s1, 4  ;;  %s29_s20 = int_to_ptr.hbm [resolvable:$true] %s28_s20 }
   0x2   :  { %12 = vsyncpa [#allocation4], 0  ;;  %s558_s21 = smov [#allocation5]   ;;  %s18_s25 = sshll.u32 %s716_s0, 4  ;;  %s19_s25 = int_to_ptr.hbm [resolvable:$true] %s18_s25 }
   0x3   :  { %s30_s22 = sshll.u32 %s558_s21, 4  ;;  %s559_s26 = smov 128   ;;  %s31_s22 = int_to_ptr.vmem [resolvable:$true] %s30_s22 }
   0x4   :  { %s560_s27 = smov 8   ;;  %s561_s28 = smov [#allocation2]  }
   0x5   :  { %36 = dma.hbm_to_vmem [thread:$0]  %s29_s20, 4096, %s31_s22, [#allocation6], %s559_s26, %s559_s26, %s560_s27  }
   0x6   :  { %s20_s29 = sshll.u32 %s561_s28, 4  ;;  %s43_s7 = sshll.u32 %s719_s3, 4  ;;  %s21_s29 = int_to_ptr.vmem [resolvable:$true] %s20_s29  ;;  %s44_s7 = int_to_ptr.hbm [resolvable:$true] %s43_s7 }
   0x7   :  { %23 = dma.hbm_to_vmem [thread:$0]  %s19_s25, 128, %s21_s29, [#allocation3]  }
   0x8   :  { %s562_s1 = smov [#allocation7]  }
   0x9   :  { %s45_s8 = sshll.u32 %s562_s1, 4  ;;  %s46_s8 = int_to_ptr.vmem [resolvable:$true] %s45_s8 }
   0xa   :  { %51 = dma.hbm_to_vmem [thread:$0]  %s44_s7, 2048, %s46_s8, [#allocation6], %s559_s26, %s559_s26, %s560_s27  }
   0xb   :  { %552 = dma.done.wait [#allocation3], 128  }
   0xc   :  { %553 = vsyncadd [#allocation3], 4294967168 }
   0xd   :  { %554 = dma.done.wait [#allocation6], 6144  }
   0xe   :  { %555 = vsyncadd [#allocation6], 4294961152  ;;  %v563_v0 = vmov 2   ;;  %v564_v1 = vmov 0   ;;  %v565_v2 = vmov 4   ;;  %v66_v3 = vld [vmem:[#allocation2] sm:$0xff]  ;;  %v67_v26 = vlaneseq }
   0xf   :  { %439 = vset.pattern.permute.xlu1 %v563_v0  ;;  %437 = vset.pattern.permute.xlu0 %v564_v1  ;;  %v566_v4 = vmov 3   ;;  %v567_v5 = vmov 1   ;;  %v568_v6 = vmov 5   ;;  %v569_v7 = vmov 6   ;;  %v261_v17 = vld [vmem:[#allocation5 + $0x78] sm:$0xff]  ;;  %v260_v19 = vld [vmem:[#allocation5 + $0x70] sm:$0xff] }
  0x10   :  { %441 = vset.pattern.permute.xlu2 %v565_v2  ;;  %93 = vperm.xlu1 %439, %v66_v3   ;;  %v570_v8 = vmov 8   ;;  %v571_v9 = vmov 7   ;;  %v572_v10 = vmov 9   ;;  %v573_v11 = vmov 13   ;;  %v277_v18 = vld [vmem:[#allocation5 + $0xf8] sm:$0xff]  ;;  %v276_v20 = vld [vmem:[#allocation5 + $0xf0] sm:$0xff] }
  0x11   :  { %71 = vperm.xlu0 %437, %v66_v3   ;;  %115 = vperm.xlu2 %441, %v66_v3   ;;  %v574_v12 = vmov 10   ;;  %v575_v13 = vmov 11   ;;  %v576_v14 = vmov 15   ;;  %v577_v15 = vmov 12   ;;  %v259_v22 = vld [vmem:[#allocation5 + $0x68] sm:$0xff]  ;;  %v258_v24 = vld [vmem:[#allocation5 + $0x60] sm:$0xff] }
  0x12   :  { %v578_v16 = vmov 14   ;;  %282 = vmatpush.msra.mxu0 %v261_v17  ;;  %302 = vmatpush.msra.mxu1 %v277_v18  ;;  %v275_v23 = vld [vmem:[#allocation5 + $0xe8] sm:$0xff]  ;;  %v274_v25 = vld [vmem:[#allocation5 + $0xe0] sm:$0xff]  ;;  %v257_v27 = vld [vmem:[#allocation5 + $0x58] sm:$0xff]  ;;  %v622_v31 = vand.u32 127, %v67_v26  ;;  %v579_v46 = vmov 0.0  }
  0x13   :  { %v273_v28 = vld [vmem:[#allocation5 + $0xd8] sm:$0xff]  ;;  %v256_v29 = vld [vmem:[#allocation5 + $0x50] sm:$0xff]  ;;  %v255_v34 = vld [vmem:[#allocation5 + $0x48] sm:$0xff]  ;;  %s580_s11 = smov [#allocation8]   ;;  %s371_s15 = sshll.u32 %s721_s5, 4  ;;  %s372_s15 = int_to_ptr.hbm [resolvable:$true] %s371_s15 }
  0x14   :  { %283 = vmatpush.msra.mxu0 %v260_v19  ;;  %303 = vmatpush.msra.mxu1 %v276_v20  ;;  %v272_v30 = vld [vmem:[#allocation5 + $0xd0] sm:$0xff]  ;;  %v271_v35 = vld [vmem:[#allocation5 + $0xc8] sm:$0xff]  ;;  %v254_v36 = vld [vmem:[#allocation5 + $0x40] sm:$0xff]  ;;  %v627_v39 = vadd.s32 128, %v622_v31  ;;  %s369_s12 = sshll.u32 %s580_s11, 4  ;;  %s370_s12 = int_to_ptr.vmem [resolvable:$true] %s369_s12 }
  0x15   :  { %v270_v38 = vld [vmem:[#allocation5 + $0xc0] sm:$0xff]  ;;  %v253_v40 = vld [vmem:[#allocation5 + $0x38] sm:$0xff]  ;;  %v252_v42 = vld [vmem:[#allocation5 + $0x30] sm:$0xff] }
  0x16   :  { %284 = vmatpush.msra.mxu0 %v259_v22  ;;  %304 = vmatpush.msra.mxu1 %v275_v23  ;;  %v269_v41 = vld [vmem:[#allocation5 + $0xb8] sm:$0xff]  ;;  %v268_v43 = vld [vmem:[#allocation5 + $0xb0] sm:$0xff]  ;;  %v251_v44 = vld [vmem:[#allocation5 + $0x28] sm:$0xff] }
  0x17   :  { %v267_v45 = vld [vmem:[#allocation5 + $0xa8] sm:$0xff]  ;;  %v250_v51 = vld [vmem:[#allocation5 + $0x20] sm:$0xff]  ;;  %v249_v56 = vld [vmem:[#allocation5 + $0x18] sm:$0xff] }
  0x18   :  { %440 = vset.pattern.permute.xlu1 %v566_v4  ;;  %285 = vmatpush.msra.mxu0 %v258_v24  ;;  %v266_v52 = vld [vmem:[#allocation5 + $0xa0] sm:$0xff]  ;;  %v265_v57 = vld [vmem:[#allocation5 + $0x98] sm:$0xff]  ;;  %v248_v0 = vld [vmem:[#allocation5 + $0x10] sm:$0xff] }
  0x19   :  { %438 = vset.pattern.permute.xlu0 %v567_v5  ;;  %104 = vperm.xlu1 %440, %v66_v3   ;;  %v264_v1 = vld [vmem:[#allocation5 + $0x90] sm:$0xff] }
  0x1a   :  { %82 = vperm.xlu0 %438, %v66_v3   ;;  %442 = vset.pattern.permute.xlu2 %v568_v6  ;;  %v247_v6 = vld [vmem:[#allocation5 + $0x8] sm:$0xff]  ;;  %v337_v22 = vld [vmem:[#allocation7 + $0x70] sm:$0xff] }
  0x1b   :  { %126 = vperm.xlu2 %442, %v66_v3   ;;  %305 = vmatpush.msra.mxu1 %v274_v25  ;;  %v336_v25 = vld [vmem:[#allocation7 + $0x68] sm:$0xff] }
  0x1c   :  { %286 = vmatpush.msra.mxu0 %v257_v27 }
  0x1d   :  { %306 = vmatpush.msra.mxu1 %v273_v28 }
  0x1e   :  { %287 = vmatpush.msra.mxu0 %v256_v29 }
  0x1f   :  { %307 = vmatpush.msra.mxu1 %v272_v30  ;;  %v335_v30 = vld [vmem:[#allocation7 + $0x60] sm:$0xff] }
  0x20   :  { %288 = vmatpush.msra.mxu0 %v255_v34 }
  0x21   :  { %443 = vset.pattern.permute.xlu1 %v569_v7  ;;  %308 = vmatpush.msra.mxu1 %v271_v35  ;;  %v263_v7 = vld [vmem:[#allocation5 + $0x88] sm:$0xff] }
  0x22   :  { %445 = vset.pattern.permute.xlu0 %v570_v8  ;;  %137 = vperm.xlu1 %443, %v66_v3   ;;  %v246_v8 = vld [vmem:[#allocation5] sm:$0xff] }
  0x23   :  { %159 = vperm.xlu0 %445, %v66_v3   ;;  %444 = vset.pattern.permute.xlu2 %v571_v9 }
  0x24   :  { %148 = vperm.xlu2 %444, %v66_v3   ;;  %289 = vmatpush.msra.mxu0 %v254_v36 }
  0x25   :  { %309 = vmatpush.msra.mxu1 %v270_v38  ;;  %v333_v38 = vld [vmem:[#allocation7 + $0x50] sm:$0xff] }
  0x26   :  { %290 = vmatpush.msra.mxu0 %v253_v40 }
  0x27   :  { %310 = vmatpush.msra.mxu1 %v269_v41 }
  0x28   :  { %291 = vmatpush.msra.mxu0 %v252_v42  ;;  %v332_v42 = vld [vmem:[#allocation7 + $0x48] sm:$0xff] }
  0x29   :  { %311 = vmatpush.msra.mxu1 %v268_v43 }
  0x2a   :  { %446 = vset.pattern.permute.xlu1 %v572_v10  ;;  %292 = vmatpush.msra.mxu0 %v251_v44 }
  0x2b   :  { %450 = vset.pattern.permute.xlu0 %v573_v11  ;;  %170 = vperm.xlu1 %446, %v66_v3   ;;  %v262_v11 = vld [vmem:[#allocation5 + $0x80] sm:$0xff] }
  0x2c   :  { %214 = vperm.xlu0 %450, %v66_v3   ;;  %447 = vset.pattern.permute.xlu2 %v574_v12 }
  0x2d   :  { %181 = vperm.xlu2 %447, %v66_v3   ;;  %312 = vmatpush.msra.mxu1 %v267_v45 }
  0x2e   :  { %293 = vmatpush.msra.mxu0 %v250_v51 }
  0x2f   :  { %313 = vmatpush.msra.mxu1 %v266_v52  ;;  %v330_v52 = vld [vmem:[#allocation7 + $0x38] sm:$0xff] }
  0x30   :  { %294 = vmatpush.msra.mxu0 %v249_v56 }
  0x31   :  { %314 = vmatpush.msra.mxu1 %v265_v57 }
  0x32   :  { %295 = vmatpush.msra.mxu0 %v248_v0 }
  0x33   :  { %448 = vset.pattern.permute.xlu1 %v575_v13  ;;  %315 = vmatpush.msra.mxu1 %v264_v1  ;;  %v327_v1 = vld [vmem:[#allocation7 + $0x20] sm:$0xff] }
  0x34   :  { %453 = vset.pattern.permute.xlu0 %v576_v14  ;;  %192 = vperm.xlu1 %448, %v66_v3  }
  0x35   :  { %449 = vset.pattern.permute.xlu2 %v577_v15  ;;  %296 = vmatpush.msra.mxu0 %v247_v6 }
  0x36   :  { %203 = vperm.xlu2 %449, %v66_v3   ;;  %316 = vmatpush.msra.mxu1 %v263_v7 }
  0x37   :  { %297 = vmatpush.msra.mxu0 %v246_v8 }
  0x38   :  { %317 = vmatpush.msra.mxu1 %v262_v11 }
  0x3c   :  { %451 = vset.pattern.permute.xlu1 %v578_v16 }
  0x3d   :  { %225 = vperm.xlu1 %451, %v66_v3  }
  0x3e   :  { %452 = vset.pattern.permute.xlu2 %v576_v14 }
  0x3f   :  { %236 = vperm.xlu2 %452, %v66_v3  }
  0x6b   :  { %v620_v21 = vpop.permute.xlu2 %115 }
  0x6c   :  { %vm117_vm8 = vcmp.eq.s32.totalorder %v620_v21, %v622_v31  ;;  %vm118_vm9 = vcmp.eq.s32.totalorder %v620_v21, %v627_v39  ;;  %v338_v21 = vld [vmem:[#allocation7 + $0x78] sm:$0xff] }
  0x6d   :  { %v390_v9 = vsel %vm117_vm8, 1.0, %v579_v46  ;;  %v391_v10 = vsel %vm118_vm9, 1.0, %v579_v46  ;;  %343 = vmatpush.msra.mxu2 %v338_v21 }
  0x6f   :  { %344 = vmatpush.msra.mxu2 %v337_v22 }
  0x71   :  { %345 = vmatpush.msra.mxu2 %v336_v25  ;;  %v455_v25 = vld [vmem:[%s720_s4] ss:$0 sm:$0xff] }
  0x73   :  { %346 = vmatpush.msra.mxu2 %v335_v30 }
  0x75   :  { %v624_v37 = vpop.permute.xlu2 %126 }
  0x76   :  { %vm128_vm10 = vcmp.eq.s32.totalorder %v624_v37, %v622_v31  ;;  %vm129_vm11 = vcmp.eq.s32.totalorder %v624_v37, %v627_v39 }
  0x77   :  { %v392_v15 = vsel %vm128_vm10, 1.0, %v579_v46  ;;  %v393_v16 = vsel %vm129_vm11, 1.0, %v579_v46 }
  0x7e   :  { %v149_v55 = vpop.permute.xlu2 %148 }
  0x7f   :  { %vm150_vm14 = vcmp.eq.s32.totalorder %v149_v55, %v622_v31  ;;  %vm151_vm15 = vcmp.eq.s32.totalorder %v149_v55, %v627_v39 }
  0x80   :  { %v396_v28 = vsel %vm150_vm14, 1.0, %v579_v46  ;;  %v397_v29 = vsel %vm151_vm15, 1.0, %v579_v46 }
  0x82   :  { %v94_v32 = vpop.permute.xlu1 %93 }
  0x83   :  { %v72_v33 = vpop.permute.xlu0 %71  ;;  %vm95_vm2 = vcmp.eq.s32.totalorder %v94_v32, %v622_v31  ;;  %vm96_vm3 = vcmp.eq.s32.totalorder %v94_v32, %v627_v39  ;;  %v334_v32 = vld [vmem:[#allocation7 + $0x58] sm:$0xff] }
  0x84   :  { %vm73_vm0 = vcmp.eq.s32.totalorder %v72_v33, %v622_v31  ;;  %vm74_vm1 = vcmp.eq.s32.totalorder %v72_v33, %v627_v39  ;;  %v386_v60 = vsel %vm95_vm2, 1.0, %v579_v46  ;;  %v387_v61 = vsel %vm96_vm3, 1.0, %v579_v46  ;;  %347 = vmatpush.msra.mxu2 %v334_v32 }
  0x85   :  { %v382_v47 = vsel %vm73_vm0, 1.0, %v579_v46  ;;  %v383_v48 = vsel %vm74_vm1, 1.0, %v579_v46 }
  0x86   :  { %348 = vmatpush.msra.mxu2 %v333_v38 }
  0x87   :  { %v182_v23 = vpop.permute.xlu2 %181 }
  0x88   :  { %349 = vmatpush.msra.mxu2 %v332_v42 }
  0x8b   :  { %v105_v49 = vpop.permute.xlu1 %104 }
  0x8c   :  { %v83_v50 = vpop.permute.xlu0 %82  ;;  %vm106_vm6 = vcmp.eq.s32.totalorder %v105_v49, %v622_v31  ;;  %vm107_vm7 = vcmp.eq.s32.totalorder %v105_v49, %v627_v39 }
  0x8d   :  { %vm84_vm4 = vcmp.eq.s32.totalorder %v83_v50, %v622_v31  ;;  %vm85_vm5 = vcmp.eq.s32.totalorder %v83_v50, %v627_v39  ;;  %v388_v2 = vsel %vm106_vm6, 1.0, %v579_v46  ;;  %v389_v3 = vsel %vm107_vm7, 1.0, %v579_v46 }
  0x8e   :  { %v384_v53 = vsel %vm84_vm4, 1.0, %v579_v46  ;;  %v385_v54 = vsel %vm85_vm5, 1.0, %v579_v46  ;;  %vm183_vm4 = vcmp.eq.s32.totalorder %v182_v23, %v622_v31  ;;  %vm184_vm5 = vcmp.eq.s32.totalorder %v182_v23, %v627_v39 }
  0x8f   :  { %v90_v58 = vadd.f32 %v384_v53, %v382_v47  ;;  %v91_v59 = vadd.f32 %v385_v54, %v383_v48  ;;  %v331_v47 = vld [vmem:[#allocation7 + $0x40] sm:$0xff]  ;;  %v402_v50 = vsel %vm183_vm4, 1.0, %v579_v46  ;;  %v403_v51 = vsel %vm184_vm5, 1.0, %v579_v46  ;;  %v329_v54 = vld [vmem:[#allocation7 + $0x30] sm:$0xff] }
  0x90   :  { %v204_v45 = vpop.permute.xlu2 %203  ;;  %350 = vmatpush.msra.mxu2 %v331_v47 }
  0x91   :  { %v101_v62 = vadd.f32 %v386_v60, %v90_v58  ;;  %v102_v63 = vadd.f32 %v387_v61, %v91_v59  ;;  %vm205_vm6 = vcmp.eq.s32.totalorder %v204_v45, %v622_v31  ;;  %vm206_vm7 = vcmp.eq.s32.totalorder %v204_v45, %v627_v39  ;;  %v328_v60 = vld [vmem:[#allocation7 + $0x28] sm:$0xff] }
  0x92   :  { %351 = vmatpush.msra.mxu2 %v330_v52  ;;  %v407_v0 = vsel %vm206_vm7, 1.0, %v579_v46 }
  0x93   :  { %v112_v4 = vadd.f32 %v388_v2, %v101_v62  ;;  %v113_v5 = vadd.f32 %v389_v3, %v102_v63  ;;  %v406_v63 = vsel %vm205_vm6, 1.0, %v579_v46 }
  0x94   :  { %v138_v14 = vpop.permute.xlu1 %137  ;;  %352 = vmatpush.msra.mxu2 %v329_v54 }
  0x95   :  { %v123_v12 = vadd.f32 %v390_v9, %v112_v4  ;;  %v124_v13 = vadd.f32 %v391_v10, %v113_v5  ;;  %vm139_vm12 = vcmp.eq.s32.totalorder %v138_v14, %v622_v31  ;;  %vm140_vm13 = vcmp.eq.s32.totalorder %v138_v14, %v627_v39  ;;  %v160_v24 = vpop.permute.xlu0 %159 }
  0x96   :  { %v394_v19 = vsel %vm139_vm12, 1.0, %v579_v46  ;;  %v395_v20 = vsel %vm140_vm13, 1.0, %v579_v46  ;;  %vm161_vm0 = vcmp.eq.s32.totalorder %v160_v24, %v622_v31  ;;  %vm162_vm1 = vcmp.eq.s32.totalorder %v160_v24, %v627_v39  ;;  %353 = vmatpush.msra.mxu2 %v328_v60 }
  0x97   :  { %v134_v17 = vadd.f32 %v392_v15, %v123_v12  ;;  %v135_v18 = vadd.f32 %v393_v16, %v124_v13  ;;  %v398_v36 = vsel %vm161_vm0, 1.0, %v579_v46  ;;  %v399_v37 = vsel %vm162_vm1, 1.0, %v579_v46 }
  0x98   :  { %354 = vmatpush.msra.mxu2 %v327_v1 }
  0x99   :  { %v145_v26 = vadd.f32 %v394_v19, %v134_v17  ;;  %v146_v27 = vadd.f32 %v395_v20, %v135_v18  ;;  %v237_v2 = vpop.permute.xlu2 %236  ;;  %v326_v18 = vld [vmem:[#allocation7 + $0x18] sm:$0xff]  ;;  %v325_v19 = vld [vmem:[#allocation7 + $0x10] sm:$0xff] }
  0x9a   :  { %vm238_vm12 = vcmp.eq.s32.totalorder %v237_v2, %v622_v31  ;;  %vm239_vm13 = vcmp.eq.s32.totalorder %v237_v2, %v627_v39  ;;  %355 = vmatpush.msra.mxu2 %v326_v18  ;;  %v454_v20 = vld [vmem:[%s718_s2] ss:$0 sm:$0xff] }
  0x9b   :  { %v156_v33 = vadd.f32 %v396_v28, %v145_v26  ;;  %v157_v34 = vadd.f32 %v397_v29, %v146_v27  ;;  %v412_v12 = vsel %vm238_vm12, 1.0, %v579_v46  ;;  %v413_v13 = vsel %vm239_vm13, 1.0, %v579_v46 }
  0x9c   :  { %356 = vmatpush.msra.mxu2 %v325_v19 }
  0x9d   :  { %v171_v35 = vpop.permute.xlu1 %170  ;;  %v167_v43 = vadd.f32 %v398_v36, %v156_v33  ;;  %v168_v44 = vadd.f32 %v399_v37, %v157_v34 }
  0x9e   :  { %vm172_vm2 = vcmp.eq.s32.totalorder %v171_v35, %v622_v31  ;;  %vm173_vm3 = vcmp.eq.s32.totalorder %v171_v35, %v627_v39  ;;  %v215_v57 = vpop.permute.xlu0 %214 }
  0x9f   :  { %v400_v40 = vsel %vm172_vm2, 1.0, %v579_v46  ;;  %v401_v41 = vsel %vm173_vm3, 1.0, %v579_v46  ;;  %vm216_vm10 = vcmp.eq.s32.totalorder %v215_v57, %v622_v31  ;;  %vm217_vm11 = vcmp.eq.s32.totalorder %v215_v57, %v627_v39 }
  0xa0   :  { %v178_v48 = vadd.f32 %v400_v40, %v167_v43  ;;  %v179_v49 = vadd.f32 %v401_v41, %v168_v44  ;;  %v408_v5 = vsel %vm216_vm10, 1.0, %v579_v46  ;;  %v409_v6 = vsel %vm217_vm11, 1.0, %v579_v46 }
  0xa2   :  { %v189_v55 = vadd.f32 %v402_v50, %v178_v48  ;;  %v190_v56 = vadd.f32 %v403_v51, %v179_v49 }
  0xa6   :  { %v193_v53 = vpop.permute.xlu1 %192 }
  0xa7   :  { %vm194_vm8 = vcmp.eq.s32.totalorder %v193_v53, %v622_v31  ;;  %vm195_vm9 = vcmp.eq.s32.totalorder %v193_v53, %v627_v39 }
  0xa8   :  { %v404_v58 = vsel %vm194_vm8, 1.0, %v579_v46  ;;  %v405_v59 = vsel %vm195_vm9, 1.0, %v579_v46 }
  0xa9   :  { %v200_v61 = vadd.f32 %v404_v58, %v189_v55  ;;  %v201_v62 = vadd.f32 %v405_v59, %v190_v56 }
  0xab   :  { %v211_v3 = vadd.f32 %v406_v63, %v200_v61  ;;  %v212_v4 = vadd.f32 %v407_v0, %v201_v62 }
  0xad   :  { %v222_v8 = vadd.f32 %v408_v5, %v211_v3  ;;  %v223_v9 = vadd.f32 %v409_v6, %v212_v4 }
  0xaf   :  { %v226_v7 = vpop.permute.xlu1 %225 }
  0xb0   :  { %vm227_vm14 = vcmp.eq.s32.totalorder %v226_v7, %v622_v31  ;;  %vm228_vm15 = vcmp.eq.s32.totalorder %v226_v7, %v627_v39  ;;  %v324_v31 = vld [vmem:[#allocation7 + $0x8] sm:$0xff]  ;;  %v323_v39 = vld [vmem:[#allocation7] sm:$0xff] }
  0xb1   :  { %v410_v10 = vsel %vm227_vm14, 1.0, %v579_v46  ;;  %v411_v11 = vsel %vm228_vm15, 1.0, %v579_v46  ;;  %357 = vmatpush.msra.mxu2 %v324_v31 }
  0xb2   :  { %v233_v14 = vadd.f32 %v410_v10, %v222_v8  ;;  %v234_v15 = vadd.f32 %v411_v11, %v223_v9 }
  0xb3   :  { %358 = vmatpush.msra.mxu2 %v323_v39 }
  0xb4   :  { %v244_v16 = vadd.f32 %v412_v12, %v233_v14  ;;  %v245_v17 = vadd.f32 %v413_v13, %v234_v15 }
  0xb6   :  { %298 = vmatmul.f32.vlgmr.msra.gmra.mxu0 %v244_v16  ;;  %318 = vmatmul.f32.vlgmr.msra.gmra.mxu1 %v245_v17 }
 0x133   :  { %v299_v21 = vpop.f32.mrf.mxu0  ;;  %v319_v22 = vpop.f32.mrf.mxu1 }
 0x134   :  { %v300_v46 = vadd.f32 %v454_v20, %v299_v21 }
 0x136   :  { %v320_v23 = vadd.f32 %v319_v22, %v300_v46 }
 0x138   :  { %v322_v24 = vmax.f32 %v320_v23, 0.0 }
 0x13a   :  { %359 = vmatmul.f32.vlgmr.msra.gmra.mxu2 %v322_v24 }
 0x1bd   :  { %v360_v26 = vpop.f32.mrf.mxu2 }
 0x1be   :  { %v361_v27 = vadd.f32 %v455_v25, %v360_v26 }
 0x1c0   :  { %363 = vst [vmem:[#allocation8] sm:$0xff] %v361_v27 }
 0x1c1   :  { %374 = dma.vmem_to_hbm [thread:$0]  %s370_s12, 128, %s372_s15, [#allocation4]  }
 0x1c2   :  { %556 = dma.done.wait [#allocation4], 128  }
 0x1c3   :  { %557 = vsyncadd [#allocation4], 4294967168 }
 0x1c4   :  { %379 = vsyncpa [#allocation3], 1 }
 0x1c5   :  { %380 = vsyncpa [#allocation6], 1 }
 0x1c6   :  { %381 = vsyncpa [#allocation4], 1 }

</bundles_post_ra>
